<compile_context>
chip_gen: v5e
topology: v5e:2x2
jax: 0.10.0
libtpu: 0.0.40
codegen_flags: <defaults>
</compile_context>

<pallas_src>
import math

import jax
import jax.numpy as jnp
from jax import lax
from jax.experimental import pallas as pl
from jax.experimental.pallas import tpu as pltpu


def _onehot_flat_kernel(idx_ref, expand_ref, class_ref, out_ref):
    # idx_ref:    (pr, q) int32  -- q = L // n positions per lane-dense output row
    # expand_ref: (q, L)  bf16   -- constant 0/1 matrix, E[c, l] = (l // n == c)
    # class_ref:  (1, L)  f32    -- constant class id per lane, l % n
    # out_ref:    (pr, L) f32    -- lane-dense slab of the flattened one-hot output
    idx = idx_ref[...].astype(jnp.bfloat16)
    # Replicate every index n times along lanes on the otherwise-idle MXU.
    rep = jnp.dot(idx, expand_ref[...], preferred_element_type=jnp.float32)
    # Single VPU compare + select, stored full-lane-width (unmasked vst).
    out_ref[...] = (rep == class_ref[...]).astype(jnp.float32)


def _onehot_direct_kernel(idx_ref, out_ref):
    # Fallback path.  idx_ref: (p, 1) int32 ; out_ref: (p, n) f32.
    # Compute directly in output orientation: class iota along lanes vs. the
    # index broadcast along lanes.  No transpose, no padded-class slice.
    p, n = out_ref.shape
    classes = lax.broadcasted_iota(jnp.int32, (p, n), 1)
    out_ref[...] = (idx_ref[...] == classes).astype(jnp.float32)


def onehot(x, n, *, block_bytes=6 * 1024 * 1024):
    """JAX/Pallas equivalent of Onehot(n).forward(x) = one_hot(x.long(), n).float()."""
    orig_shape = x.shape
    total = 1
    for d in orig_shape:
        total *= d
    if total == 0:
        return jnp.zeros((*orig_shape, n), jnp.float32)

    # PyTorch casts to long (truncation toward zero for floats); int32 suffices
    # for class ids and keeps the index DMA narrow.
    idx = x.astype(jnp.int32).reshape(-1)

    cost = pl.CostEstimate(
        flops=2 * total * n,
        transcendentals=0,
        bytes_accessed=total * n * 4 + total * 4,
    )
    # ~2 x block_bytes double-buffered stays well under this on all generations
    # (v5e/v6e 128 MiB physical, v7x 64 MiB physical / 32 MiB scoped default).
    cparams = pltpu.CompilerParams(
        dimension_semantics=("parallel",),
        vmem_limit_bytes=32 * 1024 * 1024,
    )

    # ---------- fast path: lane-dense flat output -------------------------
    L = 128 * n // math.gcd(n, 128)   # lcm(n, 128): lane-dense output row width
    q = L // n                        # positions packed per output row
    if n <= 128 and total % q == 0:
        R = total // q
        # Per-step VMEM (one buffer copy) ~= pr * (L + 128) * 4 bytes
        # (output block + lane-padded int32 index block).
        pr_cap = max(8, (block_bytes // ((L + 128) * 4)) // 8 * 8)
        pr = R if R <= 8 else min(pr_cap, (R // 8) * 8)
        # If everything fits one step but the payload is big enough to matter,
        # split in two so both v7x TensorCores get work.
        if R > 8 and pl.cdiv(R, pr) == 1 and R * L * 4 >= (2 << 20):
            pr = ((pl.cdiv(R, 2) + 7) // 8) * 8
        grid = (pl.cdiv(R, pr),)

        lane = jnp.arange(L, dtype=jnp.int32)
        col = jnp.arange(q, dtype=jnp.int32)
        expand = (lane[None, :] // n == col[:, None]).astype(jnp.bfloat16)   # (q, L)
        class_row = (lane % n).astype(jnp.float32).reshape(1, L)             # (1, L)
        idx2 = idx.reshape(R, q)

        out2d = pl.pallas_call(
            _onehot_flat_kernel,
            out_shape=jax.ShapeDtypeStruct((R, L), jnp.float32),
            grid=grid,
            in_specs=[
                pl.BlockSpec((pr, q), lambda i: (i, 0)),
                pl.BlockSpec((q, L), lambda i: (0, 0)),
                pl.BlockSpec((1, L), lambda i: (0, 0)),
            ],
            out_specs=pl.BlockSpec((pr, L), lambda i: (i, 0)),
            compiler_params=cparams,
            cost_estimate=cost,
        )(idx2, expand, class_row)
        # (R, L) row-major is exactly the flattened (total, n) one-hot output.
        return out2d.reshape(*orig_shape, n)

    # ---------- fallback: direct (positions, classes) layout ---------------
    # Used for ragged totals (total % q != 0) and n > 128.  Correctness path;
    # for n >= 128 the (p, n) output block is already lane-dense.
    n_lanes = ((n + 127) // 128) * 128          # lane-padded output width in VMEM
    p_cap = max(8, (block_bytes // ((n_lanes + 128) * 4)) // 8 * 8)
    p = total if total <= 8 else min(p_cap, (total // 8) * 8)
    grid = (pl.cdiv(total, p),)
    idx_col = idx.reshape(total, 1)

    out2d = pl.pallas_call(
        _onehot_direct_kernel,
        out_shape=jax.ShapeDtypeStruct((total, n), jnp.float32),
        grid=grid,
        in_specs=[pl.BlockSpec((p, 1), lambda i: (i, 0))],
        out_specs=pl.BlockSpec((p, n), lambda i: (i, 0)),
        compiler_params=cparams,
        cost_estimate=cost,
    )(idx_col)
    return out2d.reshape(*orig_shape, n)


if __name__ == "__main__":
    key = jax.random.PRNGKey(0)
    k1, k2, k3, k4, k5 = jax.random.split(key, 5)

    # Case 1: integer ids, n divides 128 -> lane-dense flat path (L=128, q=16).
    n1 = 8
    x1 = jax.random.randint(k1, (2, 128), 0, n1, dtype=jnp.int32)
    y1 = jax.block_until_ready(onehot(x1, n1))
    assert y1.shape == (2, 128, n1), y1.shape
    assert jnp.array_equal(y1, jax.nn.one_hot(x1, n1, dtype=jnp.float32)), "case 1"

    # Case 2: float ids (PyTorch casts to long), n=5 -> flat path L=lcm(5,128)=640.
    n2 = 5
    x2 = jax.random.randint(k2, (2, 4, 16), 0, n2, dtype=jnp.int32).astype(jnp.float32)
    y2 = jax.block_until_ready(onehot(x2, n2))
    assert y2.shape == (2, 4, 16, n2), y2.shape
    assert jnp.array_equal(
        y2, jax.nn.one_hot(x2.astype(jnp.int32), n2, dtype=jnp.float32)), "case 2"

    # Case 3: ragged total (21 positions) -> direct fallback, 2 blocks + partial tail.
    n3 = 5
    x3 = jax.random.randint(k3, (3, 7), 0, n3, dtype=jnp.int32)
    y3 = jax.block_until_ready(onehot(x3, n3))
    assert y3.shape == (3, 7, n3), y3.shape
    assert jnp.array_equal(y3, jax.nn.one_hot(x3, n3, dtype=jnp.float32)), "case 3"

    # Case 4: multi-block flat path with a partial final block (small blocks forced).
    n4 = 8
    x4 = jax.random.randint(k4, (2, 4, 520), 0, n4, dtype=jnp.int32)
    y4 = jax.block_until_ready(onehot(x4, n4, block_bytes=64 * 1024))
    assert y4.shape == (2, 4, 520, n4), y4.shape
    assert jnp.array_equal(y4, jax.nn.one_hot(x4, n4, dtype=jnp.float32)), "case 4"

    # Case 5: n > 128 -> direct path with (p, n) output blocks.
    n5 = 130
    x5 = jax.random.randint(k5, (4, 8), 0, n5, dtype=jnp.int32)
    y5 = jax.block_until_ready(onehot(x5, n5))
    assert y5.shape == (4, 8, n5), y5.shape
    assert jnp.array_equal(y5, jax.nn.one_hot(x5, n5, dtype=jnp.float32)), "case 5"

    print("KERNEL_OK")
</pallas_src>

<mosaic_0001>
module attributes {stable_mosaic.version = 11 : i64} {
  func.func @_onehot_flat_kernel(%arg0: i32, %arg1: memref<16x16xi32, #tpu.memory_space<vmem>>, %arg2: memref<16x128xbf16, #tpu.memory_space<vmem>>, %arg3: memref<1x128xf32, #tpu.memory_space<vmem>>, %arg4: memref<16x128xf32, #tpu.memory_space<vmem>>) attributes {dimension_semantics = [#tpu.dimension_semantics<parallel>], iteration_bounds = array<i64: 1>, scalar_prefetch = 0 : i64, scratch_operands = 0 : i64, tpu.core_type = #tpu.core_type<tc>, window_params = [{transform_indices = @transform_0, window_bounds = array<i64: 16, 16>}, {pipeline_mode = #tpu.pipeline_mode<synchronous>, transform_indices = @transform_1, window_bounds = array<i64: 16, 128>}, {pipeline_mode = #tpu.pipeline_mode<synchronous>, transform_indices = @transform_2, window_bounds = array<i64: 1, 128>}, {transform_indices = @transform_3, window_bounds = array<i64: 16, 128>}]} {
    %c0 = arith.constant 0 : index
    %c0_0 = arith.constant 0 : index
    %0 = vector.load %arg1[%c0, %c0_0] : memref<16x16xi32, #tpu.memory_space<vmem>>, vector<16x16xi32>
    %1 = arith.sitofp %0 : vector<16x16xi32> to vector<16x16xbf16>
    %c0_1 = arith.constant 0 : index
    %c0_2 = arith.constant 0 : index
    %2 = vector.load %arg2[%c0_1, %c0_2] : memref<16x128xbf16, #tpu.memory_space<vmem>>, vector<16x128xbf16>
    %cst = arith.constant dense<0.000000e+00> : vector<16x128xf32>
    %3 = tpu.matmul %1, %2, %cst {dimension_numbers = #tpu.dot_dimension_numbers<[1], [0], [0], [1], [0, 0, 1, 1], [], []>} : vector<16x16xbf16>, vector<16x128xbf16>, vector<16x128xf32> -> vector<16x128xf32>
    %c0_3 = arith.constant 0 : index
    %c0_4 = arith.constant 0 : index
    %4 = vector.load %arg3[%c0_3, %c0_4] : memref<1x128xf32, #tpu.memory_space<vmem>>, vector<1x128xf32>
    %5 = vector.broadcast %4 : vector<1x128xf32> to vector<16x128xf32>
    %6 = arith.cmpf oeq, %3, %5 : vector<16x128xf32>
    %7 = arith.extui %6 : vector<16x128xi1> to vector<16x128xi32>
    %8 = arith.sitofp %7 : vector<16x128xi32> to vector<16x128xf32>
    %c0_5 = arith.constant 0 : index
    %c0_6 = arith.constant 0 : index
    %9 = vector.load %arg4[%c0_5, %c0_6] : memref<16x128xf32, #tpu.memory_space<vmem>>, vector<16x128xf32>
    tpu.vector_store %arg4[%c0_5, %c0_6], %8 {strides = array<i32>} : memref<16x128xf32, #tpu.memory_space<vmem>>, vector<16x128xf32>,
    return
  }
  func.func @transform_0(%arg0: i32) -> (i32, i32) {
    %c0_i32 = arith.constant 0 : i32
    %c0_i32_0 = arith.constant 0 : i32
    return %arg0, %c0_i32 : i32, i32
  }
  func.func @transform_1(%arg0: i32) -> (i32, i32) {
    %c0_i32 = arith.constant 0 : i32
    %c0_i32_0 = arith.constant 0 : i32
    %c0_i32_1 = arith.constant 0 : i32
    return %c0_i32, %c0_i32_0 : i32, i32
  }
  func.func @transform_2(%arg0: i32) -> (i32, i32) {
    %c0_i32 = arith.constant 0 : i32
    %c0_i32_0 = arith.constant 0 : i32
    %c0_i32_1 = arith.constant 0 : i32
    return %c0_i32, %c0_i32_0 : i32, i32
  }
  func.func @transform_3(%arg0: i32) -> (i32, i32) {
    %c0_i32 = arith.constant 0 : i32
    %c0_i32_0 = arith.constant 0 : i32
    return %arg0, %c0_i32 : i32, i32
  }
}

</mosaic_0001>

<bundles_post_ra>
// kernel: tpu_custom_call.1
= control target key start
LH: loop header
LB: loop body
LE: loop exit
PB: predicated region body
PF: predicated region fallthrough
CT: control target
= control target key end

     0   :  { %8 = vsyncpa [#allocation3], 0  ;;  %s252_s0 = inlined_call_operand.hbm [shape: s32[16,16], index: 0, kind: input, shape index: {}]   ;;  %s253_s1 = inlined_call_operand.hbm [shape: bf16[16,128], index: 1, kind: input, shape index: {}]   ;;  %s254_s2 = inlined_call_operand.vmem [shape: f32[1,128], index: 2, kind: input, shape index: {}]   ;;  %s255_s3 = inlined_call_operand.hbm [shape: f32[16,128], index: 3, kind: output, shape index: {}]  }
   0x1   :  { %9 = vsyncpa [#allocation6], 0 }
   0x2   :  { %10 = vsyncpa [#allocation4], 0  ;;  %s15_s14 = sshll.u32 %s252_s0, 4  ;;  %s206_s15 = smov [#allocation2]   ;;  %s16_s14 = int_to_ptr.hbm [resolvable:$true] %s15_s14 }
   0x3   :  { %s17_s16 = sshll.u32 %s206_s15, 4  ;;  %s28_s19 = sshll.u32 %s253_s1, 4  ;;  %s18_s16 = int_to_ptr.vmem [resolvable:$true] %s17_s16  ;;  %s29_s19 = int_to_ptr.hbm [resolvable:$true] %s28_s19 }
   0x4   :  { %s207_s20 = smov 128   ;;  %s208_s21 = smov 8  }
   0x5   :  { %23 = dma.hbm_to_vmem [thread:$0]  %s16_s14, 256, %s18_s16, [#allocation3], %s207_s20, %s207_s20, %s208_s21  }
   0x6   :  { %s209_s22 = smov [#allocation5]   ;;  %s210_s24 = smov 64  }
   0x7   :  { %s30_s23 = sshll.u32 %s209_s22, 4  ;;  %s211_s0 = smov 4   ;;  %s31_s23 = int_to_ptr.vmem [resolvable:$true] %s30_s23 }
   0x8   :  { %36 = dma.hbm_to_vmem [thread:$0]  %s29_s19, 128, %s31_s23, [#allocation6], %s210_s24, %s210_s24, %s211_s0  }
   0x9   :  { %200 = dma.done.wait [#allocation3], 256  }
   0xa   :  { %201 = vsyncadd [#allocation3], 4294967040 }
   0xb   :  { %202 = dma.done.wait [#allocation6], 128  }
   0xc   :  { %203 = vsyncadd [#allocation6], 4294967168  ;;  %v118_v0 = vld [vmem:[#allocation5] sm:$0xff]  ;;  %v48_v1 = vld [vmem:[#allocation2] sm:$0xff]  ;;  %vm61_vm0 = vcmask 130048   ;;  %v212_v8 = vmov 0.0  }
   0xd   :  { %v49_v2 = vld [vmem:[#allocation2 + $0x8] sm:$0xff]  ;;  %v50_v3 = vcvt.s32.f32 %v48_v1  ;;  %72 = vmatpush.bf16.msra.mxu0 %v118_v0  ;;  %v127_v6 = vld [vmem:[%s254_s2] ss:$0 sm:$0xff]  ;;  %s213_s26 = smov [#allocation7]   ;;  %s97_s30 = sshll.u32 %s255_s3, 4  ;;  %s98_s30 = int_to_ptr.hbm [resolvable:$true] %s97_s30 }
   0xe   :  { %v51_v4 = vcvt.s32.f32 %v49_v2  ;;  %s95_s27 = sshll.u32 %s213_s26, 4  ;;  %s96_s27 = int_to_ptr.vmem [resolvable:$true] %s95_s27 }
  0x10   :  { %v52_v5 = vpack.c.bf16 %v51_v4, %v50_v3 }
  0x12   :  { %115 = vmatmul.msk.bf16.vlgmr.msra.gmra.mxu0 %vm61_vm0, %v52_v5 }
  0x8f   :  { %v74_v7 = vpop.f32.mrf.mxu0 }
  0x90   :  { %vm83_vm1 = vcmp.eq.f32.partialorder %v74_v7, %v127_v6 }
  0x91   :  { %v116_v9 = vsel %vm83_vm1, 1.0, %v212_v8 }
  0x92   :  { %89 = vst [vmem:[#allocation7] sm:$0xff] %v116_v9 }
  0x97   :  { %v76_v10 = vpop.f32.mrf.mxu0 }
  0x98   :  { %vm84_vm2 = vcmp.eq.f32.partialorder %v76_v10, %v127_v6 }
  0x99   :  { %v117_v11 = vsel %vm84_vm2, 1.0, %v212_v8 }
  0x9a   :  { %90 = vst [vmem:[#allocation7 + $0x8] sm:$0xff] %v117_v11 }
  0x9b   :  { %103 = dma.vmem_to_hbm [thread:$0]  %s96_s27, 256, %s98_s30, [#allocation4], %s207_s20, %s207_s20, %s208_s21  }
  0x9c   :  { %204 = dma.done.wait [#allocation4], 256  }
  0x9d   :  { %205 = vsyncadd [#allocation4], 4294967040 }
  0x9e   :  { %108 = vsyncpa [#allocation3], 1 }
  0x9f   :  { %109 = vsyncpa [#allocation6], 1 }
  0xa0   :  { %110 = vsyncpa [#allocation4], 1 }

</bundles_post_ra>
